<compile_context>
chip_gen: v7x
topology: tpu7x:2x2x1
jax: 0.10.0
libtpu: 0.0.40
codegen_flags: <defaults>
</compile_context>

<pallas_src>
import jax
import jax.numpy as jnp
from jax.experimental import pallas as pl
from jax.experimental.pallas import tpu as pltpu


def nextword_kernel(x_ref, w1_ref, b1_ref, w2_ref, b2_ref, out_ref):
    # lin1 + ReLU: one (B, T*E) @ (T*E, H) MXU matmul, f32 accumulation.
    # Recomputed per vocab tile -- it is tiny (B*TE*H MACs) and keeping the
    # grid axis stateless lets it stay "parallel" (megacore-shardable).
    h = jnp.dot(x_ref[...], w1_ref[...], preferred_element_type=jnp.float32)
    h = jnp.maximum(h + b1_ref[...], 0.0)

    # lin2 on this vocab tile: (B, H) @ (H, tile_v), lane-dense output store.
    logits = jnp.dot(h.astype(w2_ref.dtype), w2_ref[...],
                     preferred_element_type=jnp.float32)
    out_ref[...] = (logits + b2_ref[...]).astype(out_ref.dtype)


def nextword_forward(ids, emb, w1_pt, b1, w2_pt, b2, *, tile_v=4096):
    """ids: (B,T) int; weights in PyTorch layout (out_features, in_features)."""
    B, T = ids.shape
    V, E = emb.shape
    H = w1_pt.shape[0]
    TE = T * E
    assert w1_pt.shape == (H, TE)
    assert w2_pt.shape == (V, H)
    assert tile_v % 128 == 0 and tile_v >= 128

    # --- Wrapper-side glue (one-time weight prep + tiny activation gather). --
    # Embedding gather + flatten: B*T rows of E floats; far cheaper than
    # DMA-ing the whole (V, E) table into VMEM inside the kernel.  jnp.take
    # clamps out-of-range ids (no unchecked VMEM reads).
    x = jnp.take(emb.astype(jnp.float32), ids.reshape(-1).astype(jnp.int32),
                 axis=0).reshape(B, TE).astype(jnp.bfloat16)

    w1 = jnp.transpose(w1_pt).astype(jnp.bfloat16)            # (T*E, H)
    w2 = jnp.transpose(w2_pt).astype(jnp.bfloat16)            # (H, V)
    b1_2d = b1.reshape(1, H).astype(jnp.float32)
    b2_2d = b2.reshape(1, V).astype(jnp.float32)

    # Pad vocab to a lane-aligned multiple of the tile so every grid step gets
    # a full, unmasked (H, tile_v) / (B, tile_v) block.
    num_tiles = pl.cdiv(V, tile_v)
    v_pad = num_tiles * tile_v
    if v_pad != V:
        w2 = jnp.pad(w2, ((0, 0), (0, v_pad - V)))
        b2_2d = jnp.pad(b2_2d, ((0, 0), (0, v_pad - V)))

    # Pre-tile w2 to (num_tiles, H, tile_v) so each vocab-tile DMA is one
    # contiguous HBM read instead of H strided row segments.
    w2_tiled = w2.reshape(H, num_tiles, tile_v).transpose(1, 0, 2)

    out = pl.pallas_call(
        nextword_kernel,
        out_shape=jax.ShapeDtypeStruct((B, v_pad), jnp.float32),
        grid_spec=pltpu.PrefetchScalarGridSpec(
            num_scalar_prefetch=0,
            grid=(num_tiles,),
            in_specs=[
                pl.BlockSpec((B, TE), lambda j: (0, 0)),             # x
                pl.BlockSpec((TE, H), lambda j: (0, 0)),             # w1
                pl.BlockSpec((1, H), lambda j: (0, 0)),              # b1
                pl.BlockSpec((None, H, tile_v), lambda j: (j, 0, 0)),  # w2 tile
                pl.BlockSpec((1, tile_v), lambda j: (0, j)),         # b2 tile
            ],
            out_specs=pl.BlockSpec((B, tile_v), lambda j: (0, j)),
        ),
        compiler_params=pltpu.CompilerParams(
            dimension_semantics=("parallel",)),
    )(x, w1, b1_2d, w2_tiled, b2_2d)

    return out[:, :V]


def nextword_ref(ids, emb, w1_pt, b1, w2_pt, b2):
    """f32 reference of the module forward, modeling the kernel's bf16
    weight/activation quantization (products exact, f32 accumulation)."""
    bf = jnp.bfloat16
    x = emb[ids].reshape(ids.shape[0], -1)
    x = x.astype(bf).astype(jnp.float32)
    w1q = w1_pt.astype(bf).astype(jnp.float32)
    w2q = w2_pt.astype(bf).astype(jnp.float32)
    h = jnp.maximum(x @ w1q.T + b1, 0.0)
    h = h.astype(bf).astype(jnp.float32)
    return h @ w2q.T + b2


if __name__ == "__main__":
    # Small, module-consistent shapes (block_size=8, emb_dim=32, hidden=128).
    # V=1000 is deliberately not a multiple of 128 to exercise the padding +
    # multi-tile vocab path (real module vocab is 20068 with tile_v=4096).
    B, T, E, H, V = 8, 8, 32, 128, 1000

    key = jax.random.PRNGKey(0)
    k_ids, k_emb, k_w1, k_b1, k_w2, k_b2 = jax.random.split(key, 6)

    ids = jax.random.randint(k_ids, (B, T), 0, V, dtype=jnp.int32)
    emb = jax.random.normal(k_emb, (V, E), dtype=jnp.float32)
    lim1 = 1.0 / jnp.sqrt(T * E)
    w1_pt = jax.random.uniform(k_w1, (H, T * E), jnp.float32, -lim1, lim1)
    b1 = jax.random.uniform(k_b1, (H,), jnp.float32, -lim1, lim1)
    lim2 = 1.0 / jnp.sqrt(H)
    w2_pt = jax.random.uniform(k_w2, (V, H), jnp.float32, -lim2, lim2)
    b2 = jax.random.uniform(k_b2, (V,), jnp.float32, -lim2, lim2)

    out = nextword_forward(ids, emb, w1_pt, b1, w2_pt, b2, tile_v=512)
    out = jax.block_until_ready(out)

    ref = nextword_ref(ids, emb, w1_pt, b1, w2_pt, b2)
    assert out.shape == (B, V)
    assert jnp.allclose(out, ref, atol=2e-3, rtol=2e-2), "mismatch vs reference"

    print("KERNEL_OK")
</pallas_src>

<mosaic_0001>
module attributes {stable_mosaic.version = 11 : i64} {
  func.func @nextword_kernel(%arg0: i32, %arg1: memref<8x256xbf16, #tpu.memory_space<vmem>>, %arg2: memref<256x128xbf16, #tpu.memory_space<vmem>>, %arg3: memref<1x128xf32, #tpu.memory_space<vmem>>, %arg4: memref<1x128x512xbf16, #tpu.memory_space<vmem>>, %arg5: memref<1x512xf32, #tpu.memory_space<vmem>>, %arg6: memref<8x512xf32, #tpu.memory_space<vmem>>) attributes {dimension_semantics = [#tpu.dimension_semantics<parallel>], iteration_bounds = array<i64: 2>, scalar_prefetch = 0 : i64, scratch_operands = 0 : i64, tpu.core_type = #tpu.core_type<tc>, window_params = [{pipeline_mode = #tpu.pipeline_mode<synchronous>, transform_indices = @transform_0, window_bounds = array<i64: 8, 256>}, {pipeline_mode = #tpu.pipeline_mode<synchronous>, transform_indices = @transform_1, window_bounds = array<i64: 256, 128>}, {pipeline_mode = #tpu.pipeline_mode<synchronous>, transform_indices = @transform_2, window_bounds = array<i64: 1, 128>}, {transform_indices = @transform_3, window_bounds = array<i64: 1, 128, 512>}, {transform_indices = @transform_4, window_bounds = array<i64: 1, 512>}, {transform_indices = @transform_5, window_bounds = array<i64: 8, 512>}]} {
    %c0 = arith.constant 0 : index
    %c0_0 = arith.constant 0 : index
    %0 = vector.load %arg1[%c0, %c0_0] : memref<8x256xbf16, #tpu.memory_space<vmem>>, vector<8x256xbf16>
    %c0_1 = arith.constant 0 : index
    %c0_2 = arith.constant 0 : index
    %1 = vector.load %arg2[%c0_1, %c0_2] : memref<256x128xbf16, #tpu.memory_space<vmem>>, vector<256x128xbf16>
    %cst = arith.constant dense<0.000000e+00> : vector<8x128xf32>
    %2 = tpu.matmul %0, %1, %cst {dimension_numbers = #tpu.dot_dimension_numbers<[1], [0], [0], [1], [0, 0, 1, 1], [], []>} : vector<8x256xbf16>, vector<256x128xbf16>, vector<8x128xf32> -> vector<8x128xf32>
    %c0_3 = arith.constant 0 : index
    %c0_4 = arith.constant 0 : index
    %3 = vector.load %arg3[%c0_3, %c0_4] : memref<1x128xf32, #tpu.memory_space<vmem>>, vector<1x128xf32>
    %4 = vector.broadcast %3 : vector<1x128xf32> to vector<8x128xf32>
    %5 = arith.addf %2, %4 : vector<8x128xf32>
    %cst_5 = arith.constant 0.000000e+00 : f32
    %6 = vector.broadcast %cst_5 : f32 to vector<8x128xf32>
    %7 = arith.maximumf %5, %6 : vector<8x128xf32>
    %8 = arith.truncf %7 : vector<8x128xf32> to vector<8x128xbf16>
    %c0_6 = arith.constant 0 : index
    %c0_7 = arith.constant 0 : index
    %c0_8 = arith.constant 0 : index
    %9 = vector.load %arg4[%c0_6, %c0_7, %c0_8] : memref<1x128x512xbf16, #tpu.memory_space<vmem>>, vector<1x128x512xbf16>
    %10 = vector.shape_cast %9 : vector<1x128x512xbf16> to vector<128x512xbf16>
    %cst_9 = arith.constant dense<0.000000e+00> : vector<8x512xf32>
    %11 = tpu.matmul %8, %10, %cst_9 {dimension_numbers = #tpu.dot_dimension_numbers<[1], [0], [0], [1], [0, 0, 1, 1], [], []>} : vector<8x128xbf16>, vector<128x512xbf16>, vector<8x512xf32> -> vector<8x512xf32>
    %c0_10 = arith.constant 0 : index
    %c0_11 = arith.constant 0 : index
    %12 = vector.load %arg5[%c0_10, %c0_11] : memref<1x512xf32, #tpu.memory_space<vmem>>, vector<1x512xf32>
    %13 = vector.broadcast %12 : vector<1x512xf32> to vector<8x512xf32>
    %14 = arith.addf %11, %13 : vector<8x512xf32>
    %c0_12 = arith.constant 0 : index
    %c0_13 = arith.constant 0 : index
    %15 = vector.load %arg6[%c0_12, %c0_13] : memref<8x512xf32, #tpu.memory_space<vmem>>, vector<8x512xf32>
    tpu.vector_store %arg6[%c0_12, %c0_13], %14 {strides = array<i32>} : memref<8x512xf32, #tpu.memory_space<vmem>>, vector<8x512xf32>,
    return
  }
  func.func @transform_0(%arg0: i32) -> (i32, i32) {
    %c0_i32 = arith.constant 0 : i32
    %c0_i32_0 = arith.constant 0 : i32
    %c0_i32_1 = arith.constant 0 : i32
    return %c0_i32, %c0_i32_0 : i32, i32
  }
  func.func @transform_1(%arg0: i32) -> (i32, i32) {
    %c0_i32 = arith.constant 0 : i32
    %c0_i32_0 = arith.constant 0 : i32
    %c0_i32_1 = arith.constant 0 : i32
    return %c0_i32, %c0_i32_0 : i32, i32
  }
  func.func @transform_2(%arg0: i32) -> (i32, i32) {
    %c0_i32 = arith.constant 0 : i32
    %c0_i32_0 = arith.constant 0 : i32
    %c0_i32_1 = arith.constant 0 : i32
    return %c0_i32, %c0_i32_0 : i32, i32
  }
  func.func @transform_3(%arg0: i32) -> (i32, i32, i32) {
    %c0_i32 = arith.constant 0 : i32
    %c0_i32_0 = arith.constant 0 : i32
    %c0_i32_1 = arith.constant 0 : i32
    return %arg0, %c0_i32, %c0_i32_0 : i32, i32, i32
  }
  func.func @transform_4(%arg0: i32) -> (i32, i32) {
    %c0_i32 = arith.constant 0 : i32
    %c0_i32_0 = arith.constant 0 : i32
    return %c0_i32, %arg0 : i32, i32
  }
  func.func @transform_5(%arg0: i32) -> (i32, i32) {
    %c0_i32 = arith.constant 0 : i32
    %c0_i32_0 = arith.constant 0 : i32
    return %c0_i32, %arg0 : i32, i32
  }
}

</mosaic_0001>

<bundles_post_ra>
// kernel: tpu_custom_call.1
= control target key start
LH: loop header
LB: loop body
LE: loop exit
PB: predicated region body
PF: predicated region fallthrough
CT: control target
= control target key end

     0   :  { %s1596_s0 = inlined_call_operand.hbm [shape: bf16[8,256], index: 0, kind: input, shape index: {}]   ;;  %s1597_s1 = inlined_call_operand.hbm [shape: bf16[256,128], index: 1, kind: input, shape index: {}]   ;;  %s1598_s2 = inlined_call_operand.vmem [shape: f32[1,128], index: 2, kind: input, shape index: {}]   ;;  %s1599_s3 = inlined_call_operand.hbm [shape: bf16[2,128,512], index: 3, kind: input, shape index: {}]   ;;  %s1600_s4 = inlined_call_operand.vmem [shape: f32[1,1024], index: 4, kind: input, shape index: {}]   ;;  %s1601_s5 = inlined_call_operand.hbm [shape: f32[8,1024], index: 5, kind: output, shape index: {}]  }
   0x1   :  { %1607 = sst [smem:[#allocation14_spill]] %s1596_s0 }
   0x2   :  { %10 = vsyncpa [#allocation3], 0 }
   0x3   :  { %11 = vsyncpa [#allocation6], 0 }
   0x4   :  { %12 = vsyncpa [#allocation4], 0 }
   0x5   :  { %14 = vsyncpa [#allocation4 + $0x1], 0  ;;  %s1320_s18 = smov 0   ;;  %s1322_s19 = smov 0  }
   0x6   :  { %s1324_s20 = smov 0   ;;  %s1326_s21 = smov 0  }
   0x7 LB: > { %s1341_s22 = sadd.s32 4294967295, %s1279_s21   ;;  %s887_s23 = sadd.s32 4294967294, %s1279_s21   ;;  %s1279_s21 = sphi %s1326_s21, %s1632_s21   ;;  %s1275_s20 = sphi %s1324_s20, %s1631_s20   ;;  %s1271_s19 = sphi %s1322_s19, %s1630_s19   ;;  %s1267_s18 = sphi %s1320_s18, %s1629_s18  }
   0x8   : > { %s1345_s24 = sadd.s32 1, %s1279_s21   ;;  %s90_s25 = sadd.s32 1, %s1275_s20 }
   0x9   : > { %s87_s26 = ssub.s32 %s1279_s21, %s1345_s24  ;;  %p97_p0 = scmp.ne.s32.totalorder %s1275_s20, %s1271_s19 }
   0xa   : > { %p88_p1 = scmp.eq.s32.totalorder %s87_s26, 0  ;;  %p98_p2 = scmp.eq.s32.totalorder %s1279_s21, 0 }
   0xb   : > { %p103_p3 = scmp.ne.s32.totalorder %s1271_s19, %s1267_s18  ;;  %p1602_p4 = scmp.eq.s32.totalorder %s1341_s22, 0 }
   0xc   : > { %s1357_s27 = scalar_select %p88_p1, %s1275_s20, %s90_s25  }
   0xd   : > { %p1359_p5 = por %p98_p2, %p97_p0  ;;  %p1365_p6 = por %p1602_p4, %p103_p3 }
   0xe   : > { %1608 = sst [smem:[#allocation13_spill]] %s1357_s27  ;;  %p153_p7 = scmp.eq.s32.totalorder %s1341_s22, 1 }
   0xf   : > { %s1610_s29 = scalar_select %p1365_p6, 1, 0 }
  0x10   : > { %p159_p8 = scmp.eq.s32.totalorder %s887_s23, 1  ;;  %p888_p9 = scmp.ge.s32.totalorder %s1279_s21, 1 }
  0x11   : > { %p166_p10 = scmp.lt.s32.totalorder %s1279_s21, 3  ;;  %p1372_p11 = por %p153_p7, %p97_p0 }
  0x12   : > { %p1376_p12 = por %p159_p8, %p103_p3  ;;  %s1281_s8 = smov [#allocation2]  }
  0x13   : > { %s1611_s30 = scalar_select %p1372_p11, 1, 0 }
  0x14   : > { %s1612_s6 = scalar_select %p1376_p12, 1, 0 }
  0x15   : > { %p1380_p13 = pnand %p888_p9, %p166_p10  ;;  %s179_s9 = sshll.u32 %s1281_s8, 4  ;;  %s180_s9 = int_to_ptr.vmem [resolvable:$true] %s179_s9 }
  0x16   : > { %p1010_p4 = scmp.lt.s32.totalorder %s1279_s21, 2  ;;  %p1614_p0 = scmp.eq.s32.totalorder %s1341_s22, 0 }
  0x17   : > { %s1613_s7 = scalar_select %p1380_p13, 1, 0 }
  0x18   : > { %p993_p2 = pneg %p1380_p13  ;;  %p1396_p3 = pnand %p1010_p4, %p1359_p5 }
  0x19   : > { %s1282_s12 = smov [#allocation5]   ;;  %s1617_s0 = sld [smem:[#allocation14_spill]] }
  0x1a   : > { %p1390_p7 = pnand %p993_p2, %p1614_p0  ;;  %s189_s13 = sshll.u32 %s1282_s12, 4  ;;  %s1400_s13 = int_to_ptr.vmem [resolvable:$true] %s189_s13 }
  0x1b   : > { %s1616_s11 = scalar_select %p1396_p3, 1, 0 }
  0x1c   : > { %p1121_p9 = pneg %p1390_p7 }
  0x1f   : > { %s1119_s16 = scalar_lea.hbm %s1617_s0, 128 }
  0x20   : > { %p1120_p8 = scmp.ne.s32.totalorder %s1617_s0, %s1119_s16  ;;  %p1126_p10 = scmp.lt.u32.totalorder %s1119_s16, %s1617_s0 }
  0x22   : > { %p1122_p4 = pnand %p1121_p9, %p1120_p8 }
  0x24   : > { %p1123_p5 = pneg %p1122_p4 }
  0x26   : > { %p1128_p2 = pnand %p1126_p10, %p1123_p5 }
  0x28   : > { %1131 = shalt.err (!%p1128_p2)
}
  0x29   : > { %s1132_s28 = scalar_lea.vmem %s180_s9, 128  ;;  %p1140_p11 = scmp.lt.s32.totalorder %s180_s9, %s180_s9 }
  0x2a   : > { %p1133_p0 = scmp.ne.s32.totalorder %s180_s9, %s1132_s28  ;;  %p1141_p6 = scmp.lt.s32.totalorder %s1132_s28, %s1132_s28 }
  0x2c   : > { %p1135_p1 = pnand %p1133_p0, %p1121_p9  ;;  %p1142_p13 = por %p1141_p6, %p1140_p11 }
  0x2e   : > { %p1136_p12 = pneg %p1135_p1 }
  0x30   : > { %p1143_p3 = pnand %p1142_p13, %p1136_p12 }
  0x32   : > { %1146 = shalt.err (!%p1143_p3)
}
  0x33   : > { %996 = dma.hbm_to_vmem [thread:$0]  (!%p1390_p7), %s1617_s0, 128, %s180_s9, [#allocation3]  }
  0x34   : > { %s206_s14 = sand.u32 1, %s1279_s21   ;;  %s1147_s17 = scalar_lea.hbm %s1597_s1, 2048 }
  0x35   : > { %p1148_p1 = scmp.ne.s32.totalorder %s1597_s1, %s1147_s17  ;;  %p1154_p12 = scmp.lt.u32.totalorder %s1147_s17, %s1597_s1 }
  0x37   : > { %p1150_p6 = pnand %p1148_p1, %p1121_p9 }
  0x39   : > { %p1151_p11 = pneg %p1150_p6 }
  0x3b   : > { %p1156_p13 = pnand %p1154_p12, %p1151_p11 }
  0x3d   : > { %1159 = shalt.err (!%p1156_p13)
}
  0x3e   : > { %s1160_s9 = scalar_lea.vmem %s1400_s13, 2048  ;;  %p1168_p5 = scmp.lt.s32.totalorder %s1400_s13, %s1400_s13 }
  0x3f   : > { %p1161_p3 = scmp.ne.s32.totalorder %s1400_s13, %s1160_s9  ;;  %p1169_p10 = scmp.lt.s32.totalorder %s1160_s9, %s1160_s9 }
  0x41   : > { %p1163_p8 = pnand %p1161_p3, %p1121_p9  ;;  %p1170_p2 = por %p1169_p10, %p1168_p5 }
  0x43   : > { %p1164_p4 = pneg %p1163_p8 }
  0x45   : > { %p1171_p0 = pnand %p1170_p2, %p1164_p4 }
  0x47   : > { %1174 = shalt.err (!%p1171_p0)
}
  0x48   : > { %s1283_s8 = smov 64   ;;  %s1284_s12 = smov 4  }
  0x49   : > { %999 = dma.hbm_to_vmem [thread:$0]  (!%p1390_p7), %s1597_s1, 2048, %s1400_s13, [#allocation6], %s1283_s8, %s1283_s8, %s1284_s12  }
  0x4a   : > { %s208_s17 = sand.u32 1, %s1275_s20   ;;  %s957_s25 = sshll.u32 %s1279_s21, 12 }
  0x4b   : > { %s892_s23 = sshll.u32 %s208_s17, 8  ;;  %s1455_s9 = scalar_lea.hbm %s1599_s3, %s957_s25 }
  0x4c   : > { %s210_s0 = scalar_lea.vmem [#allocation7], %s892_s23  ;;  %s1459_s10 = scalar_lea.sflag [#allocation3], %s206_s14 }
  0x4d   : > { %s217_s27 = sshll.u32 %s210_s0, 4  ;;  %s1175_s15 = scalar_lea.hbm %s1455_s9, 4096  ;;  %s1457_s27 = int_to_ptr.vmem [resolvable:$true] %s217_s27 }
  0x4e   : > { %p1176_p7 = scmp.ne.s32.totalorder %s1455_s9, %s1175_s15  ;;  %p1618_p9 = scmp.ne.s32.totalorder %s1616_s11, 0 }
  0x4f   : > { %s1180_s12 = scalar_lea.hbm %s1599_s3, 8192  ;;  %p1181_p12 = scmp.lt.u32.totalorder %s1455_s9, %s1599_s3 }
  0x50   : > { %p1177_p1 = pneg %p1618_p9  ;;  %p1182_p13 = scmp.lt.u32.totalorder %s1180_s12, %s1175_s15 }
  0x51   : > { %p1184_p8 = scmp.lt.u32.totalorder %s1175_s15, %s1455_s9 }
  0x52   : > { %p1178_p6 = pnand %p1177_p1, %p1176_p7  ;;  %p1183_p3 = por %p1182_p13, %p1181_p12 }
  0x54   : > { %p1179_p11 = pneg %p1178_p6  ;;  %p1185_p4 = por %p1184_p8, %p1183_p3 }
  0x56   : > { %p1186_p5 = pnand %p1185_p4, %p1179_p11 }
  0x58   : > { %1189 = shalt.err (!%p1186_p5)
}
  0x59   : > { %s1190_s0 = scalar_lea.vmem %s1457_s27, 4096  ;;  %s1285_s14 = smov [#allocation7]  }
  0x5a   : > { %p1191_p10 = scmp.ne.s32.totalorder %s1457_s27, %s1190_s0  ;;  %s1195_s23 = sshll.u32 %s1285_s14, 4  ;;  %s1196_s23 = int_to_ptr.vmem [resolvable:$false] %s1195_s23 }
  0x5b   : > { %s1197_s25 = scalar_lea.vmem %s1196_s23, 8192  ;;  %p1198_p7 = scmp.lt.s32.totalorder %s1457_s27, %s1196_s23 }
  0x5c   : > { %p1193_p2 = pnand %p1191_p10, %p1177_p1  ;;  %p1199_p6 = scmp.lt.s32.totalorder %s1197_s25, %s1190_s0 }
  0x5e   : > { %p1194_p0 = pneg %p1193_p2  ;;  %p1200_p12 = por %p1199_p6, %p1198_p7 }
  0x60   : > { %p1201_p13 = pnand %p1200_p12, %p1194_p0 }
  0x62   : > { %1204 = shalt.err (!%p1201_p13)
}
  0x63   : > { %s1286_s26 = smov 256   ;;  %s1287_s28 = smov 16  }
  0x64   : > { %1003 = dma.hbm_to_vmem [thread:$0]  (!%p1618_p9), %s1455_s9, 4096, %s1457_s27, %s1459_s10, %s1286_s26, %s1286_s26, %s1287_s28  }
  0x65   : > { %p1619_p1 = scmp.ne.s32.totalorder %s1613_s7, 0 }
  0x66   : > { %p1620_p11 = scmp.eq.s32.totalorder (!%p1619_p1), %s1341_s22, 0 }
  0x67   : > { %237 = sbr.rel (%p1619_p1) target bundleno = 603 (0x25b), region = 40 }
  0x6e   : > { %1250 = dma.done.wait (%p1620_p11), [#allocation3], 128   ;;  %p1621_p3 = pmov %p1620_p11 }
  0x70   : > { %1252 = vsyncadd (%p1621_p3), [#allocation3], 4294967168  ;;  %p1622_p8 = pmov %p1621_p3 }
  0x71   : > { %p1623_p4 = pmov %p1621_p3 }
  0x72   : > { %1254 = dma.done.wait (%p1622_p8), [#allocation6], 2048  }
  0x73   : > { %1256 = vsyncadd (%p1623_p4), [#allocation6], 4294965248  ;;  %s247_s11 = sand.u32 1, %s1341_s22   ;;  %s1499_s27 = sand.u32 1, %s1271_s19  }
  0x74   : > { %s898_s7 = sshll.u32 %s1499_s27, 8  ;;  %s248_s9 = scalar_lea.sflag [#allocation3], %s247_s11 }
  0x75   : > { %s1502_s10 = scalar_lea.vmem [#allocation7], %s898_s7  ;;  %p1624_p9 = scmp.ne.s32.totalorder %s1610_s29, 0 }
  0x77   : > { %1258 = dma.done.wait (%p1624_p9), %s248_s9, 4096  }
  0x78   : > { %1260 = vsyncadd (%p1624_p9), %s248_s9, 4294963200  ;;  %v1053_v0 = vld [vmem:[#allocation5 + $0x40] sm:$0xff]   ;;  %v1055_v2 = vld [vmem:[#allocation5 + $0x48] sm:$0xff]   ;;  %v1288_v51 = vmov 0   ;;  %s900_s13 = sshll.u32 %s1341_s22, 2  ;;  %v508_v61 = vlaneseq  ;;  %s899_s17 = sshll.u32 %s1499_s27, 5 }
  0x79   : > { %v1054_v1 = vld [vmem:[#allocation5] sm:$0xff]   ;;  %959 = vmatprep.subr.bf16.mxu0 %v1053_v0  ;;  %v1056_v3 = vld [vmem:[#allocation5 + $0x8] sm:$0xff]   ;;  %v1057_v4 = vld [vmem:[#allocation5 + $0x50] sm:$0xff]   ;;  %720 = vmatprep.mubr.bf16.mxu1 %v1288_v51  ;;  %p283_p5 = scmp.lt.s32.totalorder %s900_s13, 7  ;;  %s958_s0 = sshll.u32 %s1341_s22, 9 }
  0x7a   : > { %960 = vmatpush3.bf16.msra.mxu0 %v1054_v1  ;;  %v1058_v5 = vld [vmem:[#allocation5 + $0x10] sm:$0xff]   ;;  %v1059_v6 = vld [vmem:[#allocation5 + $0x58] sm:$0xff]   ;;  %v1061_v8 = vld [vmem:[#allocation5 + $0x60] sm:$0xff]   ;;  %v509_v62 = vshrl.u32 %v508_v61, 7  ;;  %s281_s14 = scalar_lea.vmem [#allocation8], %s899_s17  ;;  %s1552_s28 = scalar_lea.hbm %s1601_s5, %s958_s0 }
  0x7b   : > { %961 = vmatprep.subr.bf16.mxu0 %v1055_v2  ;;  %v1060_v7 = vld [vmem:[#allocation5 + $0x18] sm:$0xff]   ;;  %v1062_v9 = vld [vmem:[#allocation5 + $0x20] sm:$0xff]   ;;  %v1063_v10 = vld [vmem:[#allocation5 + $0x68] sm:$0xff]   ;;  %s1634_s13 = smov (!%p283_p5, %s900_s13), 7  ;;  %s789_s23 = sshll.u32 %s281_s14, 4  ;;  %s1554_s23 = int_to_ptr.vmem [resolvable:$true] %s789_s23 }
  0x7c   : > { %v289_v11 = vld [vmem:[#allocation2] sm:$0xff]  ;;  %v1071_v13 = vld [vmem:[%s1502_s10 + $0x4] ss:$16 sps:$4 sm:$0xff]   ;;  %v1064_v14 = vld [vmem:[#allocation5 + $0x28] sm:$0xff]   ;;  %s285_s16 = scalar_lea.vmem %s1600_s4, %s1634_s13  ;;  %v510_v63 = vsub.s32 0, %v509_v62  ;;  %v518_v0 = vsub.s32 2, %v509_v62 }
  0x7d   : > { %v903_v12 = vcombine.high %v289_v11, %v289_v11  ;;  %v1076_v15 = vld [vmem:[%s1502_s10] ss:$16 sps:$4 sm:$0xff]   ;;  %v1077_v16 = vld [vmem:[%s1502_s10 + $0x24] ss:$16 sps:$4 sm:$0xff]   ;;  %688 = vmatprep.subr.bf16.mxu1 %v1071_v13  ;;  %v1067_v21 = vld [vmem:[#allocation5 + $0x78] sm:$0xff]   ;;  %v902_v28 = vcombine.low %v289_v11, %v289_v11  ;;  %v514_v2 = vsub.s32 1, %v509_v62 }
  0x7e   : > { %962 = vmatpush3.bf16.msra.mxu0 %v1056_v3  ;;  %v1065_v17 = vld [vmem:[#allocation5 + $0x70] sm:$0xff]   ;;  %689 = vmatpush1.bf16.msra.mxu1 %v1076_v15  ;;  %v1068_v24 = vld [vmem:[#allocation5 + $0x38] sm:$0xff]   ;;  %v522_v3 = vsub.s32 3, %v509_v62  ;;  %s775_s22 = scalar_lea.sflag [#allocation4], %s1499_s27  ;;  %s1205_s11 = scalar_lea.vmem %s1554_s23, 512 }
  0x7f   : > { %963 = vmatprep.subr.bf16.mxu0 %v1057_v4  ;;  %464 = vmatprep.mubr.bf16.mxu0 %v903_v12  ;;  %v1082_v18 = vld [vmem:[%s1502_s10 + $0x20] ss:$16 sps:$4 sm:$0xff]   ;;  %v1083_v19 = vld [vmem:[%s1502_s10 + $0x44] ss:$16 sps:$4 sm:$0xff]   ;;  %v1075_v25 = vld [vmem:[%s1502_s10 + $0xc] ss:$16 sps:$4 sm:$0xff]   ;;  %p1206_p10 = scmp.ne.s32.totalorder %s1554_s23, %s1205_s11 }
  0x80   : > { %690 = vmatprep.subr.bf16.mxu1 %v1077_v16  ;;  %v1066_v20 = vld [vmem:[#allocation5 + $0x30] sm:$0xff]   ;;  %v1073_v26 = vld [vmem:[%s1502_s10 + $0x8] ss:$16 sps:$4 sm:$0xff]   ;;  %v1081_v30 = vld [vmem:[%s1502_s10 + $0x2c] ss:$16 sps:$4 sm:$0xff]   ;;  %p1625_p2 = scmp.ne.s32.totalorder %s1611_s30, 0 }
  0x81   : > { %v1088_v22 = vld [vmem:[%s1502_s10 + $0x40] ss:$16 sps:$4 sm:$0xff]   ;;  %v1089_v23 = vld [vmem:[%s1502_s10 + $0x64] ss:$16 sps:$4 sm:$0xff]   ;;  %v1079_v33 = vld [vmem:[%s1502_s10 + $0x28] ss:$16 sps:$4 sm:$0xff]  }
  0x82   : > { %964 = vmatpush3.bf16.msra.mxu0 %v1058_v5  ;;  %691 = vmatpush1.bf16.msra.mxu1 %v1082_v18  ;;  %v1094_v27 = vld [vmem:[%s1502_s10 + $0x60] ss:$16 sps:$4 sm:$0xff]   ;;  %v1095_v29 = vld [vmem:[%s1502_s10 + $0x84] ss:$16 sps:$4 sm:$0xff]   ;;  %v1087_v34 = vld [vmem:[%s1502_s10 + $0x4c] ss:$16 sps:$4 sm:$0xff]   ;;  %p1207_p0 = pnand %p1206_p10, %p1625_p2 }
  0x83   : > { %965 = vmatprep.subr.bf16.mxu0 %v1059_v6  ;;  %692 = vmatprep.subr.bf16.mxu1 %v1083_v19  ;;  %v1100_v31 = vld [vmem:[%s1502_s10 + $0x80] ss:$16 sps:$4 sm:$0xff]   ;;  %v1101_v32 = vld [vmem:[%s1502_s10 + $0xa4] ss:$16 sps:$4 sm:$0xff]   ;;  %v1085_v36 = vld [vmem:[%s1502_s10 + $0x48] ss:$16 sps:$4 sm:$0xff]  }
  0x84   : > { %v1106_v35 = vld [vmem:[%s1502_s10 + $0xa0] ss:$16 sps:$4 sm:$0xff]   ;;  %v1093_v37 = vld [vmem:[%s1502_s10 + $0x6c] ss:$16 sps:$4 sm:$0xff]   ;;  %v1091_v38 = vld [vmem:[%s1502_s10 + $0x68] ss:$16 sps:$4 sm:$0xff]   ;;  %p1208_p7 = pneg %p1207_p0 }
  0x85   : > { %v1099_v39 = vld [vmem:[%s1502_s10 + $0x8c] ss:$16 sps:$4 sm:$0xff]   ;;  %v1097_v40 = vld [vmem:[%s1502_s10 + $0x88] ss:$16 sps:$4 sm:$0xff]   ;;  %v1107_v43 = vld [vmem:[%s1502_s10 + $0xc4] ss:$16 sps:$4 sm:$0xff]  }
  0x86   : > { %966 = vmatpush3.bf16.msra.mxu0 %v1060_v7  ;;  %693 = vmatpush1.bf16.msra.mxu1 %v1088_v22  ;;  %v1105_v41 = vld [vmem:[%s1502_s10 + $0xac] ss:$16 sps:$4 sm:$0xff]   ;;  %v1103_v42 = vld [vmem:[%s1502_s10 + $0xa8] ss:$16 sps:$4 sm:$0xff]   ;;  %v1112_v46 = vld [vmem:[%s1502_s10 + $0xc0] ss:$16 sps:$4 sm:$0xff]  }
  0x87   : > { %967 = vmatprep.subr.bf16.mxu0 %v1061_v8  ;;  %694 = vmatprep.subr.bf16.mxu1 %v1089_v23  ;;  %v1111_v44 = vld [vmem:[%s1502_s10 + $0xcc] ss:$16 sps:$4 sm:$0xff]   ;;  %v1109_v45 = vld [vmem:[%s1502_s10 + $0xc8] ss:$16 sps:$4 sm:$0xff]   ;;  %v1113_v47 = vld [vmem:[%s1502_s10 + $0xe4] ss:$16 sps:$4 sm:$0xff]  }
  0x88   : > { %v1117_v48 = vld [vmem:[%s1502_s10 + $0xec] ss:$16 sps:$4 sm:$0xff]   ;;  %v1115_v49 = vld [vmem:[%s1502_s10 + $0xe8] ss:$16 sps:$4 sm:$0xff]   ;;  %v1118_v50 = vld [vmem:[%s1502_s10 + $0xe0] ss:$16 sps:$4 sm:$0xff]  }
  0x89   : > { %v901_v53 = vld [vmem:[%s1598_s2] ss:$0 sm:$0xff]  ;;  %s1289_s7 = smov [#allocation8]  }
  0x8a   : > { %968 = vmatpush3.bf16.msra.mxu0 %v1062_v9  ;;  %695 = vmatpush1.bf16.msra.mxu1 %v1094_v27  ;;  %v506_v1 = vld [vmem:[%s285_s16] sm:$0xf]  ;;  %s1209_s9 = sshll.u32 %s1289_s7, 4  ;;  %s1210_s9 = int_to_ptr.vmem [resolvable:$false] %s1209_s9 }
  0x8b   : > { %969 = vmatprep.subr.bf16.mxu0 %v1063_v10  ;;  %696 = vmatprep.subr.bf16.mxu1 %v1095_v29  ;;  %v511_v4 = vrot.slane %v506_v1, %v510_v63  ;;  %v519_v5 = vrot.slane %v506_v1, %v518_v0  ;;  %v515_v6 = vrot.slane %v506_v1, %v514_v2  ;;  %s1211_s10 = scalar_lea.vmem %s1210_s9, 1024  ;;  %p1212_p6 = scmp.lt.s32.totalorder %s1554_s23, %s1210_s9 }
  0x8c   : > { %v523_v7 = vrot.slane %v506_v1, %v522_v3  ;;  %p1213_p12 = scmp.lt.s32.totalorder %s1211_s10, %s1205_s11 }
  0x8e   : > { %970 = vmatpush3.bf16.msra.mxu0 %v1064_v14  ;;  %697 = vmatpush1.bf16.msra.mxu1 %v1100_v31  ;;  %p1214_p13 = por %p1213_p12, %p1212_p6 }
  0x8f   : > { %971 = vmatprep.subr.bf16.mxu0 %v1065_v17  ;;  %698 = vmatprep.subr.bf16.mxu1 %v1101_v32 }
  0x90   : > { %p1215_p1 = pnand %p1214_p13, %p1208_p7 }
  0x92   : > { %972 = vmatpush3.bf16.msra.mxu0 %v1066_v20  ;;  %699 = vmatpush1.bf16.msra.mxu1 %v1106_v35 }
  0x93   : > { %973 = vmatprep.subr.bf16.mxu0 %v1067_v21  ;;  %700 = vmatprep.subr.bf16.mxu1 %v1107_v43 }
  0x96   : > { %974 = vmatpush3.bf16.msra.mxu0 %v1068_v24  ;;  %701 = vmatpush1.bf16.msra.mxu1 %v1112_v46 }
  0x97   : > { %729 = vmatprep.subr.bf16.mxu0 %v1075_v25  ;;  %702 = vmatprep.subr.bf16.mxu1 %v1113_v47 }
  0x99   : > { %465 = vmatmul.mubr.bf16.vlgmr.msra.gmra.mrb[0].mxu0 %v902_v28 }
  0x9a   : > { %730 = vmatpush1.bf16.msra.mxu0 %v1073_v26  ;;  %703 = vmatpush1.bf16.msra.mxu1 %v1118_v50 }
  0x9b   : > { %731 = vmatprep.subr.bf16.mxu0 %v1081_v30  ;;  %761 = vmatprep.mubr.bf16.mxu0 %v1288_v51 }
  0x9e   : > { %732 = vmatpush1.bf16.msra.mxu0 %v1079_v33 }
  0x9f   : > { %733 = vmatprep.subr.bf16.mxu0 %v1087_v34 }
  0xa2   : > { %734 = vmatpush1.bf16.msra.mxu0 %v1085_v36 }
  0xa3   : > { %735 = vmatprep.subr.bf16.mxu0 %v1093_v37 }
  0xa6   : > { %736 = vmatpush1.bf16.msra.mxu0 %v1091_v38 }
  0xa7   : > { %737 = vmatprep.subr.bf16.mxu0 %v1099_v39 }
  0xaa   : > { %738 = vmatpush1.bf16.msra.mxu0 %v1097_v40 }
  0xab   : > { %739 = vmatprep.subr.bf16.mxu0 %v1105_v41 }
  0xae   : > { %740 = vmatpush1.bf16.msra.mxu0 %v1103_v42 }
  0xaf   : > { %741 = vmatprep.subr.bf16.mxu0 %v1111_v44 }
  0xb2   : > { %742 = vmatpush1.bf16.msra.mxu0 %v1109_v45 }
  0xb3   : > { %743 = vmatprep.subr.bf16.mxu0 %v1117_v48 }
  0xb6   : > { %744 = vmatpush1.bf16.msra.mxu0 %v1115_v49 }
 0x16c   : > { %v975_v52 = vpop.f32.mrb[0].mxu0 }
 0x16d   : > { %v976_v54 = vpop.f32.mrb[1].mxu0 }
 0x16e   : > { %v977_v55 = vadd.f32 %v976_v54, %v975_v52  ;;  %v978_v56 = vpop.f32.mrb[2].mxu0 }
 0x16f   : > { %v979_v57 = vpop.f32.mrb[3].mxu0 }
 0x170   : > { %v467_v58 = vadd.f32 %v977_v55, %v901_v53 }
 0x172   : > { %v472_v59 = vmax.f32 %v467_v58, 0.0 }
 0x174   : > { %v473_v60 = vpack.c.bf16 %v472_v59, %v472_v59 }
 0x176   : > { %721 = vmatmul.mubr.bf16.vlgmr.msra.gmra.mrb[0].mxu1 %v473_v60  ;;  %762 = vmatmul.mubr.bf16.vlgmr.msra.gmra.mrb[4].mxu0 %v473_v60 }
 0x249   : > { %v722_v8 = vpop.f32.mrb[0].mxu1  ;;  %v763_v9 = vpop.f32.mrb[4].mxu0 }
 0x24a   : > { %v723_v10 = vadd.f32 %v722_v8, %v511_v4  ;;  %v764_v11 = vadd.f32 %v763_v9, %v519_v5  ;;  %v724_v12 = vpop.f32.mrb[1].mxu1  ;;  %v765_v13 = vpop.f32.mrb[5].mxu0 }
 0x24b   : > { %v725_v14 = vadd.f32 %v724_v12, %v515_v6  ;;  %v766_v15 = vadd.f32 %v765_v13, %v523_v7  ;;  %v726_v16 = vpop.f32.mrb[2].mxu1  ;;  %v767_v17 = vpop.f32.mrb[6].mxu0 }
 0x24c   : > { %770 = vst [vmem:[%s281_s14] sm:$0xff] %v723_v10  ;;  %772 = vst [vmem:[%s281_s14 + $0x10] sm:$0xff] %v764_v11  ;;  %v727_v18 = vpop.f32.mrb[3].mxu1  ;;  %v768_v19 = vpop.f32.mrb[7].mxu0 }
 0x24d   : > { %771 = vst [vmem:[%s281_s14 + $0x8] sm:$0xff] %v725_v14  ;;  %773 = vst [vmem:[%s281_s14 + $0x18] sm:$0xff] %v766_v15 }
 0x24e   : > { %1218 = shalt.err (!%p1215_p1)
}
 0x24f   : > { %s1219_s27 = scalar_lea.hbm %s1552_s28, 512  ;;  %s1223_s13 = scalar_lea.hbm %s1601_s5, 1024 }
 0x250   : > { %p1220_p11 = scmp.ne.s32.totalorder %s1552_s28, %s1219_s27  ;;  %p1224_p4 = scmp.lt.u32.totalorder %s1552_s28, %s1601_s5 }
 0x251   : > { %p1225_p9 = scmp.lt.u32.totalorder %s1223_s13, %s1219_s27  ;;  %p1227_p10 = scmp.lt.u32.totalorder %s1219_s27, %s1552_s28 }
 0x252   : > { %p1221_p3 = pnand %p1220_p11, %p1625_p2 }
 0x253   : > { %p1226_p5 = por %p1225_p9, %p1224_p4 }
 0x254   : > { %p1222_p8 = pneg %p1221_p3 }
 0x255   : > { %p1228_p0 = por %p1227_p10, %p1226_p5 }
 0x257   : > { %p1229_p7 = pnand %p1228_p0, %p1222_p8 }
 0x259   : > { %1232 = shalt.err (!%p1229_p7)
}
 0x25a   : > { %991 = dma.vmem_to_hbm [thread:$0]  (%p1625_p2), %s1554_s23, 512, %s1552_s28, %s775_s22  }
 0x25b PF: > { %s801_s16 = sand.u32 1, %s1267_s18   ;;  %p1626_p6 = scmp.ne.s32.totalorder %s1612_s6, 0 }
 0x25c   : > { %p1627_p12 = scmp.ge.s32.totalorder %s1279_s21, 2  ;;  %s802_s17 = scalar_lea.sflag [#allocation4], %s801_s16 }
 0x25e   : > { %p1005_p13 = pnand %p1627_p12, %p1626_p6 }
 0x260   : > { %1262 = dma.done.wait (!%p1005_p13), %s802_s17, 512  }
 0x261   : > { %1264 = vsyncadd (!%p1005_p13), %s802_s17, 4294966784  ;;  %s1628_s0 = sld [smem:[#allocation13_spill]]  ;;  %p17_p1 = scmp.ge.s32.totalorder %s1345_s24, 4  }
 0x262   : > { %s1629_s18 = smov %s1271_s19  ;;  %s1630_s19 = smov %s1275_s20 }
 0x263   : > { %s1632_s21 = smov %s1345_s24  ;;  %19 = sbr.rel (!%p17_p1) target bundleno = 7 (0x7), region = 95 }
 0x267   : > { %s1631_s20 = smov %s1628_s0 }
 0x26a   :  { %807 = vsyncpa [#allocation3], 1 }
 0x26b   :  { %809 = vsyncpa [#allocation3 + $0x1], 1 }
 0x26c   :  { %810 = vsyncpa [#allocation6], 1 }
 0x26d   :  { %811 = vsyncpa [#allocation4], 1 }
 0x26e   :  { %813 = vsyncpa [#allocation4 + $0x1], 1 }

</bundles_post_ra>
